<compile_context>
chip_gen: v7x
topology: tpu7x:2x2x1
jax: 0.10.0
libtpu: 0.0.40
codegen_flags: <defaults>
</compile_context>

<pallas_src>
import functools
import numpy as np
import jax
import jax.numpy as jnp
from jax.experimental import pallas as pl
from jax.experimental.pallas import tpu as pltpu

NEG_INF = -1e30


# ----------------------------- helpers ---------------------------------------
def _activate(x, activation):
    if activation == "gelu":
        return jax.nn.gelu(x, approximate=False)   # torch.nn.GELU default (erf)
    if activation == "relu":
        return jnp.maximum(x, 0.0)
    if activation == "elu":
        return jnp.where(x > 0, x, jnp.expm1(x))
    if activation == "tanh":
        return jnp.tanh(x)
    raise ValueError(activation)


@functools.lru_cache(maxsize=None)
def _vmem_limit_bytes():
    """~48 MiB on v7x (64 MiB physical VMEM), ~96-100 MiB on v5e/v6e (128 MiB)."""
    cap = 128 * 1024 * 1024
    try:
        info = pltpu.get_tpu_info()
        cap = int(getattr(info, "vmem_capacity_bytes", cap) or cap)
    except Exception:
        pass
    return min((cap * 3) // 4, 100 * 1024 * 1024)


def _pick_tiles(n_dst, n_src, hc, dst_tile, src_tile):
    t_dst = n_dst if n_dst <= dst_tile else dst_tile           # full, or mult of 8
    if src_tile is None:
        # keep the (T, S_tile, HC) f32 logits intermediate around ~8 MiB
        cap = (8 * 1024 * 1024) // max(1, t_dst * hc * 4)
        src_tile = max(128, (cap // 128) * 128)
    t_src = n_src if n_src <= src_tile else src_tile            # full, or mult of 128
    return t_dst, t_src


# ----------------------------- projection kernel -----------------------------
def _linear_kernel(x_ref, w_ref, b_ref, o_ref):
    acc = jnp.dot(x_ref[...], w_ref[...], preferred_element_type=jnp.float32)
    o_ref[...] = (acc + b_ref[...]).astype(o_ref.dtype)


def linear(x, w, b, *, row_tile=256, out_dtype=jnp.bfloat16):
    """x @ w + b with bf16 MXU operands; bf16 output (fed straight to attention)."""
    n, d_in = x.shape
    d_out = w.shape[1]
    tile = n if n <= row_tile else row_tile
    return pl.pallas_call(
        _linear_kernel,
        grid=(pl.cdiv(n, tile),),
        in_specs=[pl.BlockSpec((tile, d_in), lambda i: (i, 0)),
                  pl.BlockSpec((d_in, d_out), lambda i: (0, 0)),
                  pl.BlockSpec((1, d_out), lambda i: (0, 0))],
        out_specs=pl.BlockSpec((tile, d_out), lambda i: (i, 0)),
        out_shape=jax.ShapeDtypeStruct((n, d_out), out_dtype),
        compiler_params=pltpu.CompilerParams(
            dimension_semantics=("parallel",),
            vmem_limit_bytes=_vmem_limit_bytes()),
    )(x, w, b)


# ----------------------------- attention kernel ------------------------------
def _gatv2_attn_kernel(occ_ref, xr_ref, xl_ref, adj_ref, att_ref, bias_ref,
                       out_ref, m_sc, l_sc, acc_sc,
                       *, heads, out_c, n_src, activation):
    i = pl.program_id(0)
    j = pl.program_id(1)
    last_j = pl.num_programs(1) - 1

    # ---- init running softmax state at the first source block ---------------
    @pl.when(j == 0)
    def _():
        m_sc[...] = jnp.full_like(m_sc, NEG_INF)
        l_sc[...] = jnp.zeros_like(l_sc)
        acc_sc[...] = jnp.zeros_like(acc_sc)

    # ---- block-sparse skip: incidence blocks with no edge do nothing --------
    @pl.when(occ_ref[i, j] > 0)
    def _():
        t_dst = xr_ref.shape[0]
        s_blk = xl_ref.shape[0]

        # source-row validity (last src block may be padded past n_src);
        # sanitize x_l so padded garbage (possibly NaN) never reaches acc.
        row_ids = (jax.lax.broadcasted_iota(jnp.int32, (s_blk, 1), 0)
                   + j * s_blk)
        xl_raw = xl_ref[...]                                      # (S, HC) bf16
        xl_bf = jnp.where(row_ids < n_src, xl_raw, jnp.zeros_like(xl_raw))
        xl = xl_bf.astype(jnp.float32)
        xr = xr_ref[...].astype(jnp.float32)                      # (T, HC)

        col_ids = (jax.lax.broadcasted_iota(jnp.int32, (1, s_blk), 1)
                   + j * s_blk)
        edge = (adj_ref[...].astype(jnp.int32) > 0) & (col_ids < n_src)  # (T, S)

        # dominant O(T*S*HC) elementwise stage, fused over ALL heads
        s = xr[:, None, :] + xl[None, :, :]                       # (T, S, HC)
        s = jnp.maximum(s, 0.2 * s)                               # LeakyReLU(0.2)
        att = att_ref[...]                                        # (1, HC)

        m_prev = m_sc[...]                                        # (T, H)
        l_prev = l_sc[...]                                        # (T, H)
        acc_prev = acc_sc[...]                                    # (T, HC)
        new_m, new_l, new_acc = [], [], []
        for h in range(heads):                                    # static unroll
            lo, hi = h * out_c, (h + 1) * out_c
            # att multiply folded into the per-head reduce (no separate `w`)
            logit = jnp.sum(s[:, :, lo:hi] * att[:, lo:hi], axis=-1)   # (T, S)
            e = jnp.where(edge, logit, NEG_INF)
            m_p = m_prev[:, h:h + 1]                                   # (T, 1)
            m_n = jnp.maximum(m_p, jnp.max(e, axis=-1, keepdims=True))
            alpha = jnp.exp(m_p - m_n)                                 # (T, 1)
            p = jnp.where(edge, jnp.exp(e - m_n), 0.0)                 # (T, S)
            new_l.append(alpha * l_prev[:, h:h + 1]
                         + jnp.sum(p, axis=-1, keepdims=True))
            new_acc.append(alpha * acc_prev[:, lo:hi]
                           + jnp.dot(p.astype(jnp.bfloat16), xl_bf[:, lo:hi],
                                     preferred_element_type=jnp.float32))
            new_m.append(m_n)
        m_sc[...] = jnp.concatenate(new_m, axis=-1)
        l_sc[...] = jnp.concatenate(new_l, axis=-1)
        acc_sc[...] = jnp.concatenate(new_acc, axis=-1)

    # ---- finalize: normalize, bias, activation, single store ----------------
    @pl.when(j == last_j)
    def _():
        m_all = m_sc[...]                                         # (T, H)
        l_all = l_sc[...]
        # destinations with no incoming edge (PyG scatter-softmax over an
        # empty set) produce a zero message -> guard on the running max.
        scale = jnp.where(m_all > NEG_INF * 0.1,
                          1.0 / jnp.maximum(l_all, 1e-20), 0.0)   # (T, H)
        acc = acc_sc[...]                                         # (T, HC)
        outs = []
        for h in range(heads):
            lo, hi = h * out_c, (h + 1) * out_c
            outs.append(acc[:, lo:hi] * scale[:, h:h + 1])
        out = jnp.concatenate(outs, axis=-1) + bias_ref[...]
        out_ref[...] = _activate(out, activation)


def gatv2_conv(x_src, x_dst, adj, params, *, heads, out_c, activation,
               dst_tile=128, src_tile=None):
    """One GATv2Conv((x_src, x_dst), edges) + activation, dense int8 adjacency."""
    n_src = x_src.shape[0]
    n_dst = x_dst.shape[0]
    hc = heads * out_c

    # hoist BOTH projections; bf16 outputs are the MXU-native attention operands
    x_l = linear(x_src.astype(jnp.bfloat16),
                 params["wl"].astype(jnp.bfloat16), params["bl"])
    x_r = linear(x_dst.astype(jnp.bfloat16),
                 params["wr"].astype(jnp.bfloat16), params["br"])

    t_dst, t_src = _pick_tiles(n_dst, n_src, hc, dst_tile, src_tile)
    n_dst_t = pl.cdiv(n_dst, t_dst)
    n_src_t = pl.cdiv(n_src, t_src)

    # per-block edge counts -> scalar prefetch, lets the kernel skip empty blocks
    adj_p = jnp.pad(adj, ((0, n_dst_t * t_dst - n_dst),
                          (0, n_src_t * t_src - n_src)))
    occ = adj_p.reshape(n_dst_t, t_dst, n_src_t, t_src).astype(jnp.int32)
    occ = occ.sum(axis=(1, 3)).astype(jnp.int32)                  # (dst_t, src_t)

    att_flat = params["att"].reshape(1, hc)
    kernel = functools.partial(_gatv2_attn_kernel, heads=heads, out_c=out_c,
                               n_src=n_src, activation=activation)
    cost = pl.CostEstimate(
        flops=int(8 * n_dst * n_src * hc),
        transcendentals=int(n_dst * n_src * heads),
        bytes_accessed=int(n_dst * n_src                       # int8 adjacency
                           + 2 * (n_src + n_dst) * hc          # bf16 x_l / x_r
                           + 4 * n_dst * hc))                   # f32 output

    grid_spec = pltpu.PrefetchScalarGridSpec(
        num_scalar_prefetch=1,
        grid=(n_dst_t, n_src_t),
        in_specs=[
            pl.BlockSpec((t_dst, hc), lambda i, j, occ: (i, 0)),     # x_r (bf16)
            pl.BlockSpec((t_src, hc), lambda i, j, occ: (j, 0)),     # x_l (bf16)
            pl.BlockSpec((t_dst, t_src), lambda i, j, occ: (i, j)),  # adjacency (int8)
            pl.BlockSpec((1, hc), lambda i, j, occ: (0, 0)),         # att
            pl.BlockSpec((1, hc), lambda i, j, occ: (0, 0)),         # bias
        ],
        out_specs=pl.BlockSpec((t_dst, hc), lambda i, j, occ: (i, 0)),
        scratch_shapes=[pltpu.VMEM((t_dst, heads), jnp.float32),     # running max
                        pltpu.VMEM((t_dst, heads), jnp.float32),     # running denom
                        pltpu.VMEM((t_dst, hc), jnp.float32)])       # running acc

    return pl.pallas_call(
        kernel,
        grid_spec=grid_spec,
        out_shape=jax.ShapeDtypeStruct((n_dst, hc), jnp.float32),
        compiler_params=pltpu.CompilerParams(
            dimension_semantics=("parallel", "arbitrary"),
            vmem_limit_bytes=_vmem_limit_bytes()),
        cost_estimate=cost,
    )(occ, x_r, x_l, adj, att_flat, params["bias"])


def hypergraph_forward(params, node_emb, hyper_emb, adj_fwd, adj_bwd, *,
                       num_layers, heads, out_c, activation, use_hypergraph=True):
    residual = node_emb
    if use_hypergraph:
        for i in range(num_layers):
            # layers0[i]((node, hyperedge), forward_edge) -> per-hyperedge update
            tmp = gatv2_conv(node_emb, hyper_emb, adj_fwd, params["layers0"][i],
                             heads=heads, out_c=out_c, activation=activation)
            hyper_emb = hyper_emb + tmp
            # layers1[i]((hyperedge, node), backward_edge) -> per-node update
            tmp = gatv2_conv(hyper_emb, node_emb, adj_bwd, params["layers1"][i],
                             heads=heads, out_c=out_c, activation=activation)
            node_emb = node_emb + tmp + residual
            residual = node_emb
    return node_emb


# ----------------------------- glue / setup ----------------------------------
def build_adjacency(edge_index, n_src, n_dst, add_self_loops=True):
    """Dense int8 adjacency adj[dst, src] in {0,1}, replicating PyG
    remove_self_loops + add_self_loops (num_nodes = min(n_src, n_dst))."""
    src = np.asarray(edge_index[0]); dst = np.asarray(edge_index[1])
    if add_self_loops:
        keep = src != dst
        src, dst = src[keep], dst[keep]
        k = min(n_src, n_dst)
        src = np.concatenate([src, np.arange(k)])
        dst = np.concatenate([dst, np.arange(k)])
    adj = np.zeros((n_dst, n_src), np.int8)
    adj[dst, src] = 1
    return jnp.asarray(adj)


def init_gat_params(key, in_src, in_dst, heads, out_c):
    hc = heads * out_c
    ks = jax.random.split(key, 6)

    def glorot(k, shape):
        lim = float(np.sqrt(6.0 / (shape[0] + shape[1])))
        return jax.random.uniform(k, shape, jnp.float32, -lim, lim)

    return dict(
        wl=glorot(ks[0], (in_src, hc)),
        bl=0.01 * jax.random.normal(ks[1], (1, hc), jnp.float32),
        wr=glorot(ks[2], (in_dst, hc)),
        br=0.01 * jax.random.normal(ks[3], (1, hc), jnp.float32),
        att=glorot(ks[4], (heads, out_c)),
        bias=0.01 * jax.random.normal(ks[5], (1, hc), jnp.float32),
    )


if __name__ == "__main__":
    num_nodes, num_hyperedges = 16, 8
    dim, heads, num_layers = 32, 4, 2
    out_c = dim // heads
    activation = "gelu"

    key = jax.random.PRNGKey(0)
    k_node, k_hyper, k_layers = jax.random.split(key, 3)
    node_emb = 0.1 * jax.random.normal(k_node, (num_nodes, dim), jnp.float32)
    hyper_emb = 0.1 * jax.random.normal(k_hyper, (num_hyperedges, dim), jnp.float32)

    # synthetic bipartite incidence: each node joins two hyperedges
    src_n = np.arange(num_nodes)
    forward_edge = np.stack([
        np.concatenate([src_n, src_n]),                                   # node ids
        np.concatenate([src_n % num_hyperedges, (3 * src_n + 1) % num_hyperedges]),
    ])                                                                    # (2, 32)
    backward_edge = np.stack([forward_edge[1], forward_edge[0]])          # hyperedge -> node

    adj_fwd = build_adjacency(forward_edge, n_src=num_nodes, n_dst=num_hyperedges)
    adj_bwd = build_adjacency(backward_edge, n_src=num_hyperedges, n_dst=num_nodes)

    layer_keys = jax.random.split(k_layers, 2 * num_layers)
    params = {
        "layers0": [init_gat_params(layer_keys[2 * i], dim, dim, heads, out_c)
                    for i in range(num_layers)],
        "layers1": [init_gat_params(layer_keys[2 * i + 1], dim, dim, heads, out_c)
                    for i in range(num_layers)],
    }

    out = hypergraph_forward(params, node_emb, hyper_emb, adj_fwd, adj_bwd,
                             num_layers=num_layers, heads=heads, out_c=out_c,
                             activation=activation, use_hypergraph=True)
    out = jax.block_until_ready(out)
    assert out.shape == (num_nodes, dim) and out.dtype == jnp.float32
    assert bool(jnp.all(jnp.isfinite(out)))
    print("KERNEL_OK")
</pallas_src>

<mosaic_0001>
module attributes {stable_mosaic.version = 11 : i64} {
  func.func @_linear_kernel(%arg0: i32, %arg1: memref<16x32xbf16, #tpu.memory_space<vmem>>, %arg2: memref<32x32xbf16, #tpu.memory_space<vmem>>, %arg3: memref<1x32xf32, #tpu.memory_space<vmem>>, %arg4: memref<16x32xbf16, #tpu.memory_space<vmem>>) attributes {dimension_semantics = [#tpu.dimension_semantics<parallel>], iteration_bounds = array<i64: 1>, scalar_prefetch = 0 : i64, scratch_operands = 0 : i64, tpu.core_type = #tpu.core_type<tc>, window_params = [{transform_indices = @transform_0, window_bounds = array<i64: 16, 32>}, {pipeline_mode = #tpu.pipeline_mode<synchronous>, transform_indices = @transform_1, window_bounds = array<i64: 32, 32>}, {pipeline_mode = #tpu.pipeline_mode<synchronous>, transform_indices = @transform_2, window_bounds = array<i64: 1, 32>}, {transform_indices = @transform_3, window_bounds = array<i64: 16, 32>}]} {
    %c0 = arith.constant 0 : index
    %c0_0 = arith.constant 0 : index
    %0 = vector.load %arg1[%c0, %c0_0] : memref<16x32xbf16, #tpu.memory_space<vmem>>, vector<16x32xbf16>
    %c0_1 = arith.constant 0 : index
    %c0_2 = arith.constant 0 : index
    %1 = vector.load %arg2[%c0_1, %c0_2] : memref<32x32xbf16, #tpu.memory_space<vmem>>, vector<32x32xbf16>
    %cst = arith.constant dense<0.000000e+00> : vector<16x32xf32>
    %2 = tpu.matmul %0, %1, %cst {dimension_numbers = #tpu.dot_dimension_numbers<[1], [0], [0], [1], [0, 0, 1, 1], [], []>} : vector<16x32xbf16>, vector<32x32xbf16>, vector<16x32xf32> -> vector<16x32xf32>
    %c0_3 = arith.constant 0 : index
    %c0_4 = arith.constant 0 : index
    %3 = vector.load %arg3[%c0_3, %c0_4] : memref<1x32xf32, #tpu.memory_space<vmem>>, vector<1x32xf32>
    %4 = vector.broadcast %3 : vector<1x32xf32> to vector<16x32xf32>
    %5 = arith.addf %2, %4 : vector<16x32xf32>
    %6 = arith.truncf %5 : vector<16x32xf32> to vector<16x32xbf16>
    %c0_5 = arith.constant 0 : index
    %c0_6 = arith.constant 0 : index
    %7 = vector.load %arg4[%c0_5, %c0_6] : memref<16x32xbf16, #tpu.memory_space<vmem>>, vector<16x32xbf16>
    tpu.vector_store %arg4[%c0_5, %c0_6], %6 {strides = array<i32>} : memref<16x32xbf16, #tpu.memory_space<vmem>>, vector<16x32xbf16>,
    return
  }
  func.func @transform_0(%arg0: i32) -> (i32, i32) {
    %c0_i32 = arith.constant 0 : i32
    %c0_i32_0 = arith.constant 0 : i32
    return %arg0, %c0_i32 : i32, i32
  }
  func.func @transform_1(%arg0: i32) -> (i32, i32) {
    %c0_i32 = arith.constant 0 : i32
    %c0_i32_0 = arith.constant 0 : i32
    %c0_i32_1 = arith.constant 0 : i32
    return %c0_i32, %c0_i32_0 : i32, i32
  }
  func.func @transform_2(%arg0: i32) -> (i32, i32) {
    %c0_i32 = arith.constant 0 : i32
    %c0_i32_0 = arith.constant 0 : i32
    %c0_i32_1 = arith.constant 0 : i32
    return %c0_i32, %c0_i32_0 : i32, i32
  }
  func.func @transform_3(%arg0: i32) -> (i32, i32) {
    %c0_i32 = arith.constant 0 : i32
    %c0_i32_0 = arith.constant 0 : i32
    return %arg0, %c0_i32 : i32, i32
  }
}

</mosaic_0001>

<bundles_post_ra>
// kernel: tpu_custom_call.1
= control target key start
LH: loop header
LB: loop body
LE: loop exit
PB: predicated region body
PF: predicated region fallthrough
CT: control target
= control target key end

     0   :  { %8 = vsyncpa [#allocation3], 0  ;;  %s376_s0 = inlined_call_operand.hbm [shape: bf16[16,32], index: 0, kind: input, shape index: {}]   ;;  %s377_s1 = inlined_call_operand.hbm [shape: bf16[32,32], index: 1, kind: input, shape index: {}]   ;;  %s378_s2 = inlined_call_operand.hbm [shape: f32[1,32], index: 2, kind: input, shape index: {}]   ;;  %s379_s3 = inlined_call_operand.hbm [shape: bf16[16,32], index: 3, kind: output, shape index: {}]  }
   0x1   :  { %9 = vsyncpa [#allocation6], 0 }
   0x2   :  { %10 = vsyncpa [#allocation4], 0  ;;  %s284_s12 = smov [#allocation5]   ;;  %s285_s14 = smov [#allocation2]  }
   0x3   :  { %s28_s13 = sshll.u32 %s284_s12, 4  ;;  %s16_s15 = sshll.u32 %s285_s14, 4  ;;  %s29_s13 = int_to_ptr.vmem [resolvable:$true] %s28_s13  ;;  %s312_s15 = int_to_ptr.vmem [resolvable:$true] %s16_s15 }
   0x4   :  { %s190_s18 = scalar_lea.hbm %s377_s1, 256 }
   0x5   :  { %p191_p0 = scmp.ne.s32.totalorder %s377_s1, %s190_s18  ;;  %p194_p1 = scmp.lt.u32.totalorder %s190_s18, %s377_s1 }
   0x7   :  { %p196_p2 = pnand %p194_p1, %p191_p0 }
   0x9   :  { %199 = shalt.err (!%p196_p2)
}
   0xa   :  { %s200_s23 = scalar_lea.vmem %s29_s13, 256  ;;  %p205_p4 = scmp.lt.s32.totalorder %s29_s13, %s29_s13 }
   0xb   :  { %p201_p3 = scmp.ne.s32.totalorder %s29_s13, %s200_s23  ;;  %p206_p5 = scmp.lt.s32.totalorder %s200_s23, %s200_s23 }
   0xd   :  { %p207_p6 = por %p206_p5, %p205_p4 }
   0xf   :  { %p208_p7 = pnand %p207_p6, %p201_p3 }
  0x11   :  { %211 = shalt.err (!%p208_p7)
}
  0x12   :  { %s286_s24 = smov 64   ;;  %s287_s25 = smov 4  }
  0x13   :  { %34 = dma.hbm_to_vmem [thread:$0]  %s377_s1, 256, %s29_s13, [#allocation6], %s286_s24, %s286_s24, %s287_s25  }
  0x14   :  { %s212_s30 = scalar_lea.hbm %s376_s0, 128 }
  0x15   :  { %p213_p8 = scmp.ne.s32.totalorder %s376_s0, %s212_s30  ;;  %p216_p9 = scmp.lt.u32.totalorder %s212_s30, %s376_s0 }
  0x17   :  { %p218_p10 = pnand %p216_p9, %p213_p8 }
  0x19   :  { %221 = shalt.err (!%p218_p10)
}
  0x1a   :  { %s222_s8 = scalar_lea.vmem %s312_s15, 128  ;;  %p227_p12 = scmp.lt.s32.totalorder %s312_s15, %s312_s15 }
  0x1b   :  { %p223_p11 = scmp.ne.s32.totalorder %s312_s15, %s222_s8  ;;  %p228_p13 = scmp.lt.s32.totalorder %s222_s8, %s222_s8 }
  0x1d   :  { %p229_p0 = por %p228_p13, %p227_p12 }
  0x1f   :  { %p230_p1 = pnand %p229_p0, %p223_p11 }
  0x21   :  { %233 = shalt.err (!%p230_p1)
}
  0x22   :  { %22 = dma.hbm_to_vmem [thread:$0]  %s376_s0, 128, %s312_s15, [#allocation3], %s286_s24, %s286_s24, %s287_s25  }
  0x23   :  { %s288_s10 = smov [#allocation7]   ;;  %s234_s14 = scalar_lea.hbm %s378_s2, 16 }
  0x24   :  { %s41_s11 = sshll.u32 %s288_s10, 4  ;;  %p235_p2 = scmp.ne.s32.totalorder %s378_s2, %s234_s14  ;;  %s42_s11 = int_to_ptr.vmem [resolvable:$true] %s41_s11 }
  0x25   :  { %p238_p3 = scmp.lt.u32.totalorder %s234_s14, %s378_s2 }
  0x27   :  { %p240_p4 = pnand %p238_p3, %p235_p2 }
  0x29   :  { %243 = shalt.err (!%p240_p4)
}
  0x2a   :  { %s244_s20 = scalar_lea.vmem %s42_s11, 16  ;;  %s248_s0 = scalar_lea.vmem %s42_s11, 32 }
  0x2b   :  { %p245_p5 = scmp.ne.s32.totalorder %s42_s11, %s244_s20  ;;  %p249_p6 = scmp.lt.s32.totalorder %s42_s11, %s42_s11 }
  0x2c   :  { %p250_p7 = scmp.lt.s32.totalorder %s248_s0, %s244_s20 }
  0x2e   :  { %p251_p8 = por %p250_p7, %p249_p6 }
  0x30   :  { %p252_p9 = pnand %p251_p8, %p245_p5 }
  0x32   :  { %255 = shalt.err (!%p252_p9)
}
  0x33   :  { %44 = dma.hbm_to_vmem [thread:$0]  %s378_s2, 16, %s42_s11, [#allocation6]  }
  0x34   :  { %278 = dma.done.wait [#allocation3], 128  }
  0x35   :  { %279 = vsyncadd [#allocation3], 4294967168 }
  0x36   :  { %280 = dma.done.wait [#allocation6], 272  }
  0x37   :  { %281 = vsyncadd [#allocation6], 4294967024  ;;  %v289_v0 = vmov 0.0   ;;  %vm290_vm0 = vmmov 0   ;;  %v187_v1 = vld [vmem:[#allocation5] sm:$0xff]   ;;  %v188_v2 = vld [vmem:[#allocation5 + $0x8] sm:$0xff]  }
  0x38   :  { %171 = vmatprep.subr.bf16.mxu0 %v289_v0  ;;  %175 = vmatprep.mubr.msk.bf16.mxu0 %vm290_vm0, %v289_v0  ;;  %v189_v3 = vld [vmem:[#allocation2] sm:$0xff]   ;;  %vm85_vm1 = vcmask 261120   ;;  %v159_v4 = vld [vmem:[#allocation7] ss:$0 sm:$0xff]  ;;  %vm138_vm2 = vcmask 257024   ;;  %s291_s2 = smov [#allocation8]  }
  0x39   :  { %172 = vmatpush3.bf16.msra.mxu0 %v187_v1  ;;  %s146_s22 = sshll.u32 %s291_s2, 4  ;;  %s147_s22 = int_to_ptr.vmem [resolvable:$true] %s146_s22 }
  0x3a   :  { %173 = vmatprep.subr.bf16.mxu0 %v289_v0  ;;  %s256_s23 = scalar_lea.vmem %s147_s22, 128  ;;  %p261_p11 = scmp.lt.s32.totalorder %s147_s22, %s147_s22 }
  0x3b   :  { %p257_p10 = scmp.ne.s32.totalorder %s147_s22, %s256_s23  ;;  %p262_p12 = scmp.lt.s32.totalorder %s256_s23, %s256_s23 }
  0x3d   :  { %174 = vmatpush3.bf16.msra.mxu0 %v188_v2  ;;  %p263_p13 = por %p262_p12, %p261_p11 }
  0x3f   :  { %p264_p0 = pnand %p263_p13, %p257_p10 }
  0x40   :  { %176 = vmatmul.mubr.msk.bf16.vlgmr.msra.gmra.mrb[0].mxu0 %vm85_vm1, %v189_v3 }
 0x113   :  { %v123_v5 = vpop.f32.mrb[0].mxu0 }
 0x114   :  { %v124_v6 = vadd.f32 %v159_v4, %v123_v5  ;;  %v177_v7 = vpop.f32.mrb[1].mxu0 }
 0x115   :  { %v126_v8 = vpop.f32.mrb[2].mxu0 }
 0x116   :  { %v166_v9 = vpack.c.bf16 %v124_v6, %v124_v6  ;;  %v127_v10 = vadd.f32 %v159_v4, %v126_v8  ;;  %v178_v11 = vpop.f32.mrb[3].mxu0 }
 0x118   :  { %v167_v12 = vpack.c.bf16 %v127_v10, %v127_v10  ;;  %139 = vst.msk [vmem:[#allocation8] sm:$0xf] %vm138_vm2, %v166_v9 }
 0x11a   :  { %140 = vst.msk [vmem:[#allocation8 + $0x4] sm:$0xf] %vm138_vm2, %v167_v12 }
 0x11b   :  { %267 = shalt.err (!%p264_p0)
}
 0x11c   :  { %s268_s28 = scalar_lea.hbm %s379_s3, 128 }
 0x11d   :  { %p269_p1 = scmp.ne.s32.totalorder %s379_s3, %s268_s28  ;;  %p272_p2 = scmp.lt.u32.totalorder %s268_s28, %s379_s3 }
 0x11f   :  { %p274_p3 = pnand %p272_p2, %p269_p1 }
 0x121   :  { %277 = shalt.err (!%p274_p3)
}
 0x122   :  { %152 = dma.vmem_to_hbm [thread:$0]  %s147_s22, 128, %s379_s3, [#allocation4], %s286_s24, %s286_s24, %s287_s25  }
 0x123   :  { %282 = dma.done.wait [#allocation4], 128  }
 0x124   :  { %283 = vsyncadd [#allocation4], 4294967168 }
 0x125   :  { %156 = vsyncpa [#allocation3], 1 }
 0x126   :  { %157 = vsyncpa [#allocation6], 1 }
 0x127   :  { %158 = vsyncpa [#allocation4], 1 }

</bundles_post_ra>
